<compile_context>
chip_gen: v7x
topology: tpu7x:2x2x1
jax: 0.10.0
libtpu: 0.0.40
codegen_flags: <defaults>
</compile_context>

<pallas_src>
import jax
import jax.numpy as jnp
from jax.experimental import pallas as pl
from jax.experimental.pallas import tpu as pltpu

HIDDEN = 300
HIDDEN2 = 2 * HIDDEN                   # 600
N_HEADS = 4
N_CLASSES = 3
OUT_DIM = N_HEADS * N_CLASSES          # 12
BN_EPS = 1e-5


def _fc_classifier_kernel(x_ref, wfc_ref, bfc_ref, wln2_ref, bln2_ref,
                          whead_ref, bhead_ref, out_ref):
    x = x_ref[...]                                                 # (TB, D) f32

    # fc: Linear(D, 600) + sigmoid. bf16 MXU operands, f32 accumulation.
    h = jnp.dot(x.astype(jnp.bfloat16), wfc_ref[...],
                preferred_element_type=jnp.float32) + bfc_ref[...]
    # sigmoid = 1 / (1 + exp(-h)): exp + approx reciprocal both run on the EUP.
    h = pl.reciprocal(1.0 + jnp.exp(-h), approx=True)

    # ln2: Linear(600, 300) + relu.
    h = jnp.dot(h.astype(jnp.bfloat16), wln2_ref[...],
                preferred_element_type=jnp.float32) + bln2_ref[...]
    h = jnp.maximum(h, 0.0)

    # All 4 heads fused into one (TB, 12) matmul. Eval-mode BatchNorm is
    # already folded into whead/bhead; eval-mode dropout = identity.
    y = jnp.dot(h.astype(jnp.bfloat16), whead_ref[...],
                preferred_element_type=jnp.float32) + bhead_ref[...]
    out_ref[...] = y


def _round_up(n, m):
    return ((n + m - 1) // m) * m


def prepare_params(params):
    """Fold eval-mode BN into the head weights, fuse the 4 heads, cast weights to bf16."""
    (wfc, bfc, wln2, bln2, gamma, beta, mean, var, wout, bout) = params
    scale = gamma * jax.lax.rsqrt(var + BN_EPS)                    # (4, 1, H)
    shift = beta - mean * scale                                    # (4, 1, H)
    wout_f = scale.reshape(N_HEADS, HIDDEN, 1) * wout              # (4, H, 3)
    bout_f = bout + jnp.matmul(shift, wout)                        # (4, 1, 3)
    # Interleave heads on the lane axis: head i occupies lanes [3i, 3i+3).
    whead = wout_f.transpose(1, 0, 2).reshape(HIDDEN, OUT_DIM)     # (H, 12)
    bhead = bout_f.transpose(1, 0, 2).reshape(1, OUT_DIM)          # (1, 12)
    return (wfc.astype(jnp.bfloat16), bfc.astype(jnp.float32),
            wln2.astype(jnp.bfloat16), bln2.astype(jnp.float32),
            whead.astype(jnp.bfloat16), bhead.astype(jnp.float32))


def _pick_batch_tile(B, tile_b):
    """Multiple-of-8 batch tile; shrink it when padding waste would exceed half a tile."""
    tb = min(tile_b, _round_up(B, 8))
    tb = max(8, (tb // 8) * 8)
    while tb > 64 and (_round_up(B, tb) - B) * 2 >= tb:
        tb //= 2
    return tb


def fc_classifier_forward(x, prepared, *, tile_b=512):
    """Run the fused forward pass. x: (B, D) float32. Returns 4 arrays of shape (B, 3)."""
    B, D = x.shape
    wfc, bfc, wln2, bln2, whead, bhead = prepared

    tb = _pick_batch_tile(B, tile_b)
    pb = _round_up(B, tb)                      # padded batch
    if pb != B:
        x = jnp.pad(x, ((0, pb - B), (0, 0)))
    n_tiles = pb // tb

    def const_spec(shape):
        # Constant block index -> stays VMEM-resident across grid steps.
        return pl.BlockSpec(shape, lambda i: (0, 0))

    flops = 2 * pb * (D * HIDDEN2 + HIDDEN2 * HIDDEN + HIDDEN * OUT_DIM)
    bytes_accessed = (x.size * 4 + wfc.size * 2 + wln2.size * 2 + whead.size * 2
                      + bfc.size * 4 + bln2.size * 4 + bhead.size * 4
                      + pb * OUT_DIM * 4)

    out = pl.pallas_call(
        _fc_classifier_kernel,
        out_shape=jax.ShapeDtypeStruct((pb, OUT_DIM), jnp.float32),
        grid_spec=pltpu.PrefetchScalarGridSpec(
            num_scalar_prefetch=0,
            grid=(n_tiles,),
            in_specs=[
                pl.BlockSpec((tb, D), lambda i: (i, 0)),           # x tiled over batch
                const_spec(wfc.shape), const_spec(bfc.shape),
                const_spec(wln2.shape), const_spec(bln2.shape),
                const_spec(whead.shape), const_spec(bhead.shape),
            ],
            out_specs=pl.BlockSpec((tb, OUT_DIM), lambda i: (i, 0)),
        ),
        compiler_params=pltpu.CompilerParams(
            dimension_semantics=("parallel",),        # shards across v7x's 2 TCs
            vmem_limit_bytes=32 * 1024 * 1024,        # safe on v5e/v6e/v7x
        ),
        cost_estimate=pl.CostEstimate(
            flops=flops, transcendentals=pb * HIDDEN2,
            bytes_accessed=bytes_accessed),
    )(x, wfc, bfc, wln2, bln2, whead, bhead)

    out = out[:B]
    return [out[:, h * N_CLASSES:(h + 1) * N_CLASSES] for h in range(N_HEADS)]


def init_params(key, input_dim):
    """Deterministic synthetic parameters matching FCClassifier's shapes.

    torch.nn.Linear stores weights (out, in); here they are stored (in, out)."""
    ks = jax.random.split(key, 10)

    def uniform(k, shape, fan_in):
        bound = 1.0 / jnp.sqrt(jnp.float32(fan_in))
        return jax.random.uniform(k, shape, jnp.float32, -bound, bound)

    wfc = uniform(ks[0], (input_dim, HIDDEN2), input_dim)          # (D, 600)
    bfc = uniform(ks[1], (1, HIDDEN2), input_dim)                  # (1, 600)
    wln2 = uniform(ks[2], (HIDDEN2, HIDDEN), HIDDEN2)              # (600, 300)
    bln2 = uniform(ks[3], (1, HIDDEN), HIDDEN2)                    # (1, 300)

    # BatchNorm1d params / running stats for the 4 heads, stacked.
    gamma = 1.0 + 0.05 * jax.random.normal(ks[4], (N_HEADS, 1, HIDDEN), jnp.float32)
    beta = 0.05 * jax.random.normal(ks[5], (N_HEADS, 1, HIDDEN), jnp.float32)
    mean = 0.1 * jax.random.normal(ks[6], (N_HEADS, 1, HIDDEN), jnp.float32)
    var = 1.0 + 0.1 * jax.random.uniform(ks[7], (N_HEADS, 1, HIDDEN), jnp.float32)

    wout = uniform(ks[8], (N_HEADS, HIDDEN, N_CLASSES), HIDDEN)    # (4, 300, 3)
    bout = uniform(ks[9], (N_HEADS, 1, N_CLASSES), HIDDEN)         # (4, 1, 3)

    return (wfc, bfc, wln2, bln2, gamma, beta, mean, var, wout, bout)


def reference_forward(x, params):
    """Pure-JAX f32 reference of the PyTorch forward (eval mode)."""
    (wfc, bfc, wln2, bln2, gamma, beta, mean, var, wout, bout) = params
    h = jax.nn.sigmoid(x @ wfc + bfc)
    h = jnp.maximum(h @ wln2 + bln2, 0.0)
    outs = []
    for i in range(N_HEADS):
        hb = gamma[i] * (h - mean[i]) * jax.lax.rsqrt(var[i] + BN_EPS) + beta[i]
        outs.append(hb @ wout[i] + bout[i])
    return outs


if __name__ == "__main__":
    key = jax.random.PRNGKey(0)
    k_x, k_p = jax.random.split(key)

    B, D = 8, 32          # small shapes: batch=8, input feature dim=32
    x = jax.random.normal(k_x, (B, D), dtype=jnp.float32)
    params = init_params(k_p, D)
    prepared = prepare_params(params)

    outs = fc_classifier_forward(x, prepared)
    outs = jax.block_until_ready(outs)
    refs = reference_forward(x, params)

    assert len(outs) == N_HEADS
    for i, (o, r) in enumerate(zip(outs, refs)):
        assert o.shape == (B, N_CLASSES)
        assert o.dtype == jnp.float32
        err = float(jnp.max(jnp.abs(o - r)))
        assert err < 7.5e-2, f"head {i}: max abs err {err} vs f32 reference"

    print("KERNEL_OK")
</pallas_src>

<mosaic_0001>
module attributes {stable_mosaic.version = 11 : i64} {
  func.func @_fc_classifier_kernel(%arg0: i32, %arg1: memref<8x32xf32, #tpu.memory_space<vmem>>, %arg2: memref<32x600xbf16, #tpu.memory_space<vmem>>, %arg3: memref<1x600xf32, #tpu.memory_space<vmem>>, %arg4: memref<600x300xbf16, #tpu.memory_space<vmem>>, %arg5: memref<1x300xf32, #tpu.memory_space<vmem>>, %arg6: memref<300x12xbf16, #tpu.memory_space<vmem>>, %arg7: memref<1x12xf32, #tpu.memory_space<vmem>>, %arg8: memref<8x12xf32, #tpu.memory_space<vmem>>) attributes {dimension_semantics = [#tpu.dimension_semantics<parallel>], iteration_bounds = array<i64: 1>, scalar_prefetch = 0 : i64, scratch_operands = 0 : i64, tpu.core_type = #tpu.core_type<tc>, window_params = [{transform_indices = @transform_0, window_bounds = array<i64: 8, 32>}, {pipeline_mode = #tpu.pipeline_mode<synchronous>, transform_indices = @transform_1, window_bounds = array<i64: 32, 600>}, {pipeline_mode = #tpu.pipeline_mode<synchronous>, transform_indices = @transform_2, window_bounds = array<i64: 1, 600>}, {pipeline_mode = #tpu.pipeline_mode<synchronous>, transform_indices = @transform_3, window_bounds = array<i64: 600, 300>}, {pipeline_mode = #tpu.pipeline_mode<synchronous>, transform_indices = @transform_4, window_bounds = array<i64: 1, 300>}, {pipeline_mode = #tpu.pipeline_mode<synchronous>, transform_indices = @transform_5, window_bounds = array<i64: 300, 12>}, {pipeline_mode = #tpu.pipeline_mode<synchronous>, transform_indices = @transform_6, window_bounds = array<i64: 1, 12>}, {transform_indices = @transform_7, window_bounds = array<i64: 8, 12>}]} {
    %c0 = arith.constant 0 : index
    %c0_0 = arith.constant 0 : index
    %0 = vector.load %arg1[%c0, %c0_0] : memref<8x32xf32, #tpu.memory_space<vmem>>, vector<8x32xf32>
    %1 = arith.truncf %0 : vector<8x32xf32> to vector<8x32xbf16>
    %c0_1 = arith.constant 0 : index
    %c0_2 = arith.constant 0 : index
    %2 = vector.load %arg2[%c0_1, %c0_2] : memref<32x600xbf16, #tpu.memory_space<vmem>>, vector<32x600xbf16>
    %cst = arith.constant dense<0.000000e+00> : vector<8x600xf32>
    %3 = tpu.matmul %1, %2, %cst {dimension_numbers = #tpu.dot_dimension_numbers<[1], [0], [0], [1], [0, 0, 1, 1], [], []>} : vector<8x32xbf16>, vector<32x600xbf16>, vector<8x600xf32> -> vector<8x600xf32>
    %c0_3 = arith.constant 0 : index
    %c0_4 = arith.constant 0 : index
    %4 = vector.load %arg3[%c0_3, %c0_4] : memref<1x600xf32, #tpu.memory_space<vmem>>, vector<1x600xf32>
    %5 = vector.broadcast %4 : vector<1x600xf32> to vector<8x600xf32>
    %6 = arith.addf %3, %5 : vector<8x600xf32>
    %cst_5 = arith.constant 0.000000e+00 : f32
    %7 = vector.broadcast %cst_5 : f32 to vector<8x600xf32>
    %8 = arith.subf %7, %6 : vector<8x600xf32>
    %9 = math.exp %8 : vector<8x600xf32>
    %cst_6 = arith.constant 1.000000e+00 : f32
    %10 = vector.broadcast %cst_6 : f32 to vector<8x600xf32>
    %11 = arith.addf %10, %9 : vector<8x600xf32>
    %12 = tpu.reciprocal %11 {approx = true} : vector<8x600xf32> -> vector<8x600xf32>
    %13 = arith.truncf %12 : vector<8x600xf32> to vector<8x600xbf16>
    %c0_7 = arith.constant 0 : index
    %c0_8 = arith.constant 0 : index
    %14 = vector.load %arg4[%c0_7, %c0_8] : memref<600x300xbf16, #tpu.memory_space<vmem>>, vector<600x300xbf16>
    %cst_9 = arith.constant dense<0.000000e+00> : vector<8x300xf32>
    %15 = tpu.matmul %13, %14, %cst_9 {dimension_numbers = #tpu.dot_dimension_numbers<[1], [0], [0], [1], [0, 0, 1, 1], [], []>} : vector<8x600xbf16>, vector<600x300xbf16>, vector<8x300xf32> -> vector<8x300xf32>
    %c0_10 = arith.constant 0 : index
    %c0_11 = arith.constant 0 : index
    %16 = vector.load %arg5[%c0_10, %c0_11] : memref<1x300xf32, #tpu.memory_space<vmem>>, vector<1x300xf32>
    %17 = vector.broadcast %16 : vector<1x300xf32> to vector<8x300xf32>
    %18 = arith.addf %15, %17 : vector<8x300xf32>
    %cst_12 = arith.constant 0.000000e+00 : f32
    %19 = vector.broadcast %cst_12 : f32 to vector<8x300xf32>
    %20 = arith.maximumf %18, %19 : vector<8x300xf32>
    %21 = arith.truncf %20 : vector<8x300xf32> to vector<8x300xbf16>
    %c0_13 = arith.constant 0 : index
    %c0_14 = arith.constant 0 : index
    %22 = vector.load %arg6[%c0_13, %c0_14] : memref<300x12xbf16, #tpu.memory_space<vmem>>, vector<300x12xbf16>
    %cst_15 = arith.constant dense<0.000000e+00> : vector<8x12xf32>
    %23 = tpu.matmul %21, %22, %cst_15 {dimension_numbers = #tpu.dot_dimension_numbers<[1], [0], [0], [1], [0, 0, 1, 1], [], []>} : vector<8x300xbf16>, vector<300x12xbf16>, vector<8x12xf32> -> vector<8x12xf32>
    %c0_16 = arith.constant 0 : index
    %c0_17 = arith.constant 0 : index
    %24 = vector.load %arg7[%c0_16, %c0_17] : memref<1x12xf32, #tpu.memory_space<vmem>>, vector<1x12xf32>
    %25 = vector.broadcast %24 : vector<1x12xf32> to vector<8x12xf32>
    %26 = arith.addf %23, %25 : vector<8x12xf32>
    %c0_18 = arith.constant 0 : index
    %c0_19 = arith.constant 0 : index
    %27 = vector.load %arg8[%c0_18, %c0_19] : memref<8x12xf32, #tpu.memory_space<vmem>>, vector<8x12xf32>
    tpu.vector_store %arg8[%c0_18, %c0_19], %26 {strides = array<i32>} : memref<8x12xf32, #tpu.memory_space<vmem>>, vector<8x12xf32>,
    return
  }
  func.func @transform_0(%arg0: i32) -> (i32, i32) {
    %c0_i32 = arith.constant 0 : i32
    %c0_i32_0 = arith.constant 0 : i32
    return %arg0, %c0_i32 : i32, i32
  }
  func.func @transform_1(%arg0: i32) -> (i32, i32) {
    %c0_i32 = arith.constant 0 : i32
    %c0_i32_0 = arith.constant 0 : i32
    %c0_i32_1 = arith.constant 0 : i32
    return %c0_i32, %c0_i32_0 : i32, i32
  }
  func.func @transform_2(%arg0: i32) -> (i32, i32) {
    %c0_i32 = arith.constant 0 : i32
    %c0_i32_0 = arith.constant 0 : i32
    %c0_i32_1 = arith.constant 0 : i32
    return %c0_i32, %c0_i32_0 : i32, i32
  }
  func.func @transform_3(%arg0: i32) -> (i32, i32) {
    %c0_i32 = arith.constant 0 : i32
    %c0_i32_0 = arith.constant 0 : i32
    %c0_i32_1 = arith.constant 0 : i32
    return %c0_i32, %c0_i32_0 : i32, i32
  }
  func.func @transform_4(%arg0: i32) -> (i32, i32) {
    %c0_i32 = arith.constant 0 : i32
    %c0_i32_0 = arith.constant 0 : i32
    %c0_i32_1 = arith.constant 0 : i32
    return %c0_i32, %c0_i32_0 : i32, i32
  }
  func.func @transform_5(%arg0: i32) -> (i32, i32) {
    %c0_i32 = arith.constant 0 : i32
    %c0_i32_0 = arith.constant 0 : i32
    %c0_i32_1 = arith.constant 0 : i32
    return %c0_i32, %c0_i32_0 : i32, i32
  }
  func.func @transform_6(%arg0: i32) -> (i32, i32) {
    %c0_i32 = arith.constant 0 : i32
    %c0_i32_0 = arith.constant 0 : i32
    %c0_i32_1 = arith.constant 0 : i32
    return %c0_i32, %c0_i32_0 : i32, i32
  }
  func.func @transform_7(%arg0: i32) -> (i32, i32) {
    %c0_i32 = arith.constant 0 : i32
    %c0_i32_0 = arith.constant 0 : i32
    return %arg0, %c0_i32 : i32, i32
  }
}

</mosaic_0001>

<bundles_post_ra>
// kernel: tpu_custom_call.1
= control target key start
LH: loop header
LB: loop body
LE: loop exit
PB: predicated region body
PF: predicated region fallthrough
CT: control target
= control target key end

     0   :  { %v2076_v2 = vmov 0   ;;  %vm121_vm0 = vcmask 261120   ;;  %v2077_v17 = vmov 0.0   ;;  %vm2078_vm1 = vmmov 0   ;;  %s2628_s0 = inlined_call_operand.vmem [shape: f32[8,32], index: 0, kind: input, shape index: {}]   ;;  %s2629_s1 = inlined_call_operand.vmem [shape: bf16[32,600], index: 1, kind: input, shape index: {}]   ;;  %s2630_s2 = inlined_call_operand.vmem [shape: f32[1,600], index: 2, kind: input, shape index: {}]   ;;  %s2631_s3 = inlined_call_operand.vmem [shape: bf16[600,300], index: 3, kind: input, shape index: {}]   ;;  %s2632_s4 = inlined_call_operand.vmem [shape: f32[1,300], index: 4, kind: input, shape index: {}]   ;;  %s2633_s5 = inlined_call_operand.vmem [shape: bf16[300,12], index: 5, kind: input, shape index: {}]   ;;  %s2634_s6 = inlined_call_operand.vmem [shape: f32[1,12], index: 6, kind: input, shape index: {}]   ;;  %s2635_s7 = inlined_call_operand.hbm [shape: f32[8,12], index: 7, kind: output, shape index: {}]  }
   0x1   :  { %v1848_v0 = vld [vmem:[%s2629_s1 + $0x4] ss:$20 sps:$4 sm:$0xff]   ;;  %v1850_v1 = vld [vmem:[%s2629_s1] ss:$20 sps:$4 sm:$0xff]   ;;  %157 = vmatprep.mubr.bf16.mxu0 %v2076_v2  ;;  %v1853_v4 = vld [vmem:[%s2629_s1 + $0x28] ss:$20 sps:$4 sm:$0xff]  }
   0x2   :  { %125 = vmatprep.subr.bf16.mxu0 %v1848_v0  ;;  %v1851_v3 = vld [vmem:[%s2629_s1 + $0x2c] ss:$20 sps:$4 sm:$0xff]   ;;  %v1854_v8 = vld [vmem:[%s2629_s1 + $0x8] ss:$20 sps:$4 sm:$0xff]   ;;  %v1862_v10 = vld [vmem:[%s2631_s3 + $0x4] ss:$12 sps:$4 sm:$0xff]  }
   0x3   :  { %126 = vmatpush1.bf16.msra.mxu0 %v1850_v1  ;;  %v28_v5 = vld [vmem:[%s2628_s0] sm:$0xff]  ;;  %v1859_v9 = vld [vmem:[%s2629_s1 + $0x34] ss:$20 sps:$4 sm:$0xff]   ;;  %1058 = vmatprep.subr.bf16.mxu1 %v1862_v10  ;;  %v1870_v18 = vld [vmem:[%s2631_s3 + $0x30] ss:$12 sps:$4 sm:$0xff]  }
   0x4   :  { %127 = vmatprep.subr.bf16.mxu0 %v1851_v3  ;;  %v1856_v6 = vld [vmem:[%s2629_s1 + $0xc] ss:$20 sps:$4 sm:$0xff]   ;;  %v29_v7 = vpack.c.bf16 %v28_v5, %v28_v5  ;;  %v1865_v12 = vld [vmem:[%s2631_s3 + $0x1c] ss:$12 sps:$4 sm:$0xff]   ;;  %v1857_v13 = vld [vmem:[%s2629_s1 + $0x30] ss:$20 sps:$4 sm:$0xff]  }
   0x5   :  { %v1864_v11 = vld [vmem:[%s2631_s3] ss:$12 sps:$4 sm:$0xff]   ;;  %v1867_v14 = vld [vmem:[%s2631_s3 + $0x18] ss:$12 sps:$4 sm:$0xff]   ;;  %v1873_v21 = vld [vmem:[%s2631_s3 + $0x48] ss:$12 sps:$4 sm:$0xff]  }
   0x6   :  { %1059 = vmatpush1.bf16.msra.mxu1 %v1864_v11  ;;  %v1868_v15 = vld [vmem:[%s2631_s3 + $0x34] ss:$12 sps:$4 sm:$0xff]   ;;  %v1860_v16 = vld [vmem:[%s2629_s1 + $0x10] ss:$20 sps:$4 sm:$0xff]   ;;  %v1871_v19 = vld [vmem:[%s2631_s3 + $0x4c] ss:$12 sps:$4 sm:$0xff]  }
   0x7   :  { %128 = vmatpush1.bf16.msra.mxu0 %v1853_v4  ;;  %1060 = vmatprep.subr.bf16.mxu1 %v1865_v12  ;;  %v1861_v20 = vld [vmem:[%s2629_s1 + $0x38] ss:$20 sps:$4 sm:$0xff]   ;;  %v1874_v22 = vld [vmem:[%s2631_s3 + $0x64] ss:$12 sps:$4 sm:$0xff]   ;;  %v1877_v24 = vld [vmem:[%s2631_s3 + $0x7c] ss:$12 sps:$4 sm:$0xff]  }
   0x8   :  { %166 = vmatprep.subr.bf16.mxu0 %v1856_v6  ;;  %v1876_v23 = vld [vmem:[%s2631_s3 + $0x60] ss:$12 sps:$4 sm:$0xff]   ;;  %v1879_v25 = vld [vmem:[%s2631_s3 + $0x78] ss:$12 sps:$4 sm:$0xff]   ;;  %v1882_v27 = vld [vmem:[%s2631_s3 + $0x90] ss:$12 sps:$4 sm:$0xff]  }
   0x9   :  { %v1880_v26 = vld [vmem:[%s2631_s3 + $0x94] ss:$12 sps:$4 sm:$0xff]   ;;  %v1883_v28 = vld [vmem:[%s2631_s3 + $0xac] ss:$12 sps:$4 sm:$0xff]  }
   0xa   :  { %1579 = vmatmul.mubr.msk.bf16.vlgmr.msra.gmra.mrb[0].mxu0 %vm121_vm0, %v29_v7  ;;  %1061 = vmatpush1.bf16.msra.mxu1 %v1867_v14  ;;  %v1885_v29 = vld [vmem:[%s2631_s3 + $0xa8] ss:$12 sps:$4 sm:$0xff]  }
   0xb   :  { %167 = vmatpush1.bf16.msra.mxu0 %v1854_v8  ;;  %198 = vmatprep.mubr.bf16.mxu0 %v2076_v2 }
   0xc   :  { %168 = vmatprep.subr.bf16.mxu0 %v1859_v9  ;;  %1062 = vmatprep.subr.bf16.mxu1 %v1868_v15 }
   0xe   :  { %1063 = vmatpush1.bf16.msra.mxu1 %v1870_v18 }
   0xf   :  { %169 = vmatpush1.bf16.msra.mxu0 %v1857_v13  ;;  %1064 = vmatprep.subr.bf16.mxu1 %v1871_v19 }
  0x10   :  { %1800 = vmatprep.subr.bf16.mxu0 %v2077_v17 }
  0x12   :  { %1580 = vmatmul.mubr.msk.bf16.vlgmr.msra.gmra.mrb[4].mxu0 %vm121_vm0, %v29_v7  ;;  %1065 = vmatpush1.bf16.msra.mxu1 %v1873_v21 }
  0x13   :  { %1801 = vmatpush3.bf16.msra.mxu0 %v1860_v16  ;;  %1804 = vmatprep.mubr.msk.bf16.mxu0 %vm2078_vm1, %v2077_v17 }
  0x14   :  { %1802 = vmatprep.subr.bf16.mxu0 %v2077_v17  ;;  %1066 = vmatprep.subr.bf16.mxu1 %v1874_v22 }
  0x16   :  { %1067 = vmatpush1.bf16.msra.mxu1 %v1876_v23 }
  0x17   :  { %1803 = vmatpush3.bf16.msra.mxu0 %v1861_v20  ;;  %1068 = vmatprep.subr.bf16.mxu1 %v1877_v24 }
  0x1a   :  { %1805 = vmatmul.mubr.msk.bf16.vlgmr.msra.gmra.mrb[8].mxu0 %vm121_vm0, %v29_v7  ;;  %1069 = vmatpush1.bf16.msra.mxu1 %v1879_v25 }
  0x1b   :  { %1070 = vmatprep.subr.bf16.mxu1 %v1880_v26 }
  0x1e   :  { %1071 = vmatpush1.bf16.msra.mxu1 %v1882_v27 }
  0x1f   :  { %1072 = vmatprep.subr.bf16.mxu1 %v1883_v28 }
  0x22   :  { %1073 = vmatpush1.bf16.msra.mxu1 %v1885_v29 }
  0x23   :  { %12 = vsyncpa [#allocation3], 0  ;;  %v1886_v30 = vld [vmem:[%s2631_s3 + $0xc4] ss:$12 sps:$4 sm:$0xff]   ;;  %v1888_v31 = vld [vmem:[%s2631_s3 + $0xc8] ss:$12 sps:$4 sm:$0xff]   ;;  %v44_v0 = vlaneseq }
  0x24   :  { %v1889_v32 = vld [vmem:[%s2631_s3 + $0xc0] ss:$12 sps:$4 sm:$0xff]   ;;  %v1890_v33 = vld [vmem:[%s2631_s3 + $0x8] ss:$12 sps:$4 sm:$0xff]   ;;  %1074 = vmatprep.subr.bf16.mxu1 %v1886_v30  ;;  %1723 = vmatprep.subr.bf16.mxu0 %v1888_v31  ;;  %v1894_v36 = vld [vmem:[%s2631_s3 + $0xd8] ss:$12 sps:$4 sm:$0xff]  }
  0x25   :  { %1724 = vmatpush3.bf16.msra.mxu0 %v1890_v33  ;;  %v1891_v34 = vld [vmem:[%s2631_s3 + $0xdc] ss:$12 sps:$4 sm:$0xff]   ;;  %v1893_v35 = vld [vmem:[%s2631_s3 + $0xe0] ss:$12 sps:$4 sm:$0xff]   ;;  %v1898_v39 = vld [vmem:[%s2631_s3 + $0xf8] ss:$12 sps:$4 sm:$0xff]  }
  0x26   :  { %1075 = vmatpush1.bf16.msra.mxu1 %v1889_v32  ;;  %v1895_v37 = vld [vmem:[%s2631_s3 + $0x20] ss:$12 sps:$4 sm:$0xff]   ;;  %1725 = vmatprep.subr.bf16.mxu0 %v1893_v35  ;;  %v1899_v40 = vld [vmem:[%s2631_s3 + $0xf0] ss:$12 sps:$4 sm:$0xff]   ;;  %v1900_v41 = vld [vmem:[%s2631_s3 + $0x38] ss:$12 sps:$4 sm:$0xff]  }
  0x27   :  { %1076 = vmatprep.subr.bf16.mxu1 %v1891_v34  ;;  %v1896_v38 = vld [vmem:[%s2631_s3 + $0xf4] ss:$12 sps:$4 sm:$0xff]   ;;  %v1901_v42 = vld [vmem:[%s2631_s3 + $0x10c] ss:$12 sps:$4 sm:$0xff]   ;;  %v1903_v43 = vld [vmem:[%s2631_s3 + $0x110] ss:$12 sps:$4 sm:$0xff]  }
  0x28   :  { %v1904_v44 = vld [vmem:[%s2631_s3 + $0x108] ss:$12 sps:$4 sm:$0xff]   ;;  %v1905_v45 = vld [vmem:[%s2631_s3 + $0x50] ss:$12 sps:$4 sm:$0xff]   ;;  %v1909_v48 = vld [vmem:[%s2631_s3 + $0x120] ss:$12 sps:$4 sm:$0xff]  }
  0x29   :  { %1726 = vmatpush3.bf16.msra.mxu0 %v1895_v37  ;;  %v1906_v46 = vld [vmem:[%s2631_s3 + $0x124] ss:$12 sps:$4 sm:$0xff]   ;;  %v1908_v47 = vld [vmem:[%s2631_s3 + $0x128] ss:$12 sps:$4 sm:$0xff]   ;;  %v1913_v51 = vld [vmem:[%s2631_s3 + $0x140] ss:$12 sps:$4 sm:$0xff]  }
  0x2a   :  { %1077 = vmatpush1.bf16.msra.mxu1 %v1894_v36  ;;  %1727 = vmatprep.subr.bf16.mxu0 %v1898_v39  ;;  %v1910_v49 = vld [vmem:[%s2631_s3 + $0x68] ss:$12 sps:$4 sm:$0xff]   ;;  %v1914_v52 = vld [vmem:[%s2631_s3 + $0x138] ss:$12 sps:$4 sm:$0xff]   ;;  %v1915_v53 = vld [vmem:[%s2631_s3 + $0x80] ss:$12 sps:$4 sm:$0xff]  }
  0x2b   :  { %1078 = vmatprep.subr.bf16.mxu1 %v1896_v38  ;;  %v1911_v50 = vld [vmem:[%s2631_s3 + $0x13c] ss:$12 sps:$4 sm:$0xff]   ;;  %v1916_v54 = vld [vmem:[%s2631_s3 + $0x154] ss:$12 sps:$4 sm:$0xff]   ;;  %v1918_v55 = vld [vmem:[%s2631_s3 + $0x158] ss:$12 sps:$4 sm:$0xff]  }
  0x2c   :  { %v1919_v56 = vld [vmem:[%s2631_s3 + $0x150] ss:$12 sps:$4 sm:$0xff]   ;;  %v1920_v57 = vld [vmem:[%s2631_s3 + $0x98] ss:$12 sps:$4 sm:$0xff]   ;;  %v1924_v60 = vld [vmem:[%s2631_s3 + $0x168] ss:$12 sps:$4 sm:$0xff]  }
  0x2d   :  { %1728 = vmatpush3.bf16.msra.mxu0 %v1900_v41  ;;  %v1921_v58 = vld [vmem:[%s2631_s3 + $0x16c] ss:$12 sps:$4 sm:$0xff]   ;;  %v1923_v59 = vld [vmem:[%s2631_s3 + $0x170] ss:$12 sps:$4 sm:$0xff]   ;;  %v1929_v63 = vld [vmem:[%s2631_s3 + $0x248] ss:$12 sps:$4 sm:$0xff]  }
  0x2e   :  { %1079 = vmatpush1.bf16.msra.mxu1 %v1899_v40  ;;  %1729 = vmatprep.subr.bf16.mxu0 %v1903_v43  ;;  %v1925_v61 = vld [vmem:[%s2631_s3 + $0xb0] ss:$12 sps:$4 sm:$0xff]   ;;  %v2312_v1 = vshrl.u32 %v44_v0, 7  ;;  %v2318_v4 = vld [vmem:[%s2630_s2] sm:$0x1f]  ;;  %vm1048_vm2 = vcmask 1043456  }
  0x2f   :  { %1080 = vmatprep.subr.bf16.mxu1 %v1901_v42  ;;  %v1928_v62 = vld [vmem:[%s2631_s3 + $0x184] ss:$12 sps:$4 sm:$0xff]   ;;  %v1941_v0 = vld [vmem:[%s2631_s3 + $0x1c8] ss:$12 sps:$4 sm:$0xff]   ;;  %vm1044_vm3 = vcmask 719872   ;;  %vm1469_vm4 = vcmask 1045504  }
  0x30   :  { %v46_v3 = vsub.s32 0, %v2312_v1  ;;  %v50_v5 = vsub.s32 1, %v2312_v1  ;;  %v58_v13 = vsub.s32 3, %v2312_v1  ;;  %v54_v27 = vsub.s32 2, %v2312_v1 }
  0x31   :  { %1730 = vmatpush3.bf16.msra.mxu0 %v1905_v45  ;;  %vm1465_vm5 = vcmask 359424   ;;  %vm1553_vm6 = vcmask 97280  }
  0x32   :  { %1081 = vmatpush1.bf16.msra.mxu1 %v1904_v44  ;;  %1731 = vmatprep.subr.bf16.mxu0 %v1908_v47  ;;  %v47_v6 = vrot.slane %v2318_v4, %v46_v3  ;;  %v51_v7 = vrot.slane %v2318_v4, %v50_v5  ;;  %v59_v20 = vrot.slane %v2318_v4, %v58_v13  ;;  %v1930_v47 = vld [vmem:[%s2631_s3 + $0x188] ss:$12 sps:$4 sm:$0xff]   ;;  %v1954_v13 = vld [vmem:[%s2631_s3 + $0x2c0] ss:$12 sps:$4 sm:$0xff]  }
  0x33   :  { %1082 = vmatprep.subr.bf16.mxu1 %v1906_v46  ;;  %v55_v31 = vrot.slane %v2318_v4, %v54_v27  ;;  %v1926_v46 = vld [vmem:[%s2631_s3 + $0x180] ss:$12 sps:$4 sm:$0xff]  }
  0x35   :  { %1732 = vmatpush3.bf16.msra.mxu0 %v1910_v49  ;;  %v1933_v49 = vld [vmem:[%s2631_s3 + $0x19c] ss:$12 sps:$4 sm:$0xff]  }
  0x36   :  { %1083 = vmatpush1.bf16.msra.mxu1 %v1909_v48  ;;  %1733 = vmatprep.subr.bf16.mxu0 %v1913_v51  ;;  %v1931_v51 = vld [vmem:[%s2631_s3 + $0x198] ss:$12 sps:$4 sm:$0xff]  }
  0x37   :  { %1084 = vmatprep.subr.bf16.mxu1 %v1911_v50  ;;  %v1934_v50 = vld [vmem:[%s2631_s3 + $0x260] ss:$12 sps:$4 sm:$0xff]  }
  0x39   :  { %1734 = vmatpush3.bf16.msra.mxu0 %v1915_v53  ;;  %v1938_v53 = vld [vmem:[%s2631_s3 + $0x1b4] ss:$12 sps:$4 sm:$0xff]  }
  0x3a   :  { %1085 = vmatpush1.bf16.msra.mxu1 %v1914_v52  ;;  %1735 = vmatprep.subr.bf16.mxu0 %v1918_v55  ;;  %v1935_v52 = vld [vmem:[%s2631_s3 + $0x1a0] ss:$12 sps:$4 sm:$0xff]   ;;  %v62_v55 = vsub.s32 4, %v2312_v1 }
  0x3b   :  { %1086 = vmatprep.subr.bf16.mxu1 %v1916_v54  ;;  %v1939_v54 = vld [vmem:[%s2631_s3 + $0x278] ss:$12 sps:$4 sm:$0xff]   ;;  %v2030_v1 = vld [vmem:[%s2633_s5 + $0x88] sm:$0xff]  }
  0x3d   :  { %1736 = vmatpush3.bf16.msra.mxu0 %v1920_v57  ;;  %v1936_v57 = vld [vmem:[%s2631_s3 + $0x1b0] ss:$12 sps:$4 sm:$0xff]  }
  0x3e   :  { %1087 = vmatpush1.bf16.msra.mxu1 %v1919_v56  ;;  %1737 = vmatprep.subr.bf16.mxu0 %v1923_v59 }
  0x3f   :  { %1088 = vmatprep.subr.bf16.mxu1 %v1921_v58  ;;  %v1940_v58 = vld [vmem:[%s2631_s3 + $0x1b8] ss:$12 sps:$4 sm:$0xff]  }
  0x41   :  { %1738 = vmatpush3.bf16.msra.mxu0 %v1925_v61  ;;  %v1944_v61 = vld [vmem:[%s2631_s3 + $0x290] ss:$12 sps:$4 sm:$0xff]  }
  0x42   :  { %1089 = vmatpush1.bf16.msra.mxu1 %v1924_v60  ;;  %1745 = vmatprep.subr.bf16.mxu0 %v1929_v63  ;;  %v1943_v60 = vld [vmem:[%s2631_s3 + $0x1cc] ss:$12 sps:$4 sm:$0xff]  }
  0x43   :  { %1099 = vmatprep.subr.bf16.mxu1 %v1928_v62  ;;  %v63_v62 = vrot.slane %v2318_v4, %v62_v55  ;;  %v1949_v4 = vld [vmem:[%s2631_s3 + $0x2a8] ss:$12 sps:$4 sm:$0xff]   ;;  %v1995_v55 = vld [vmem:[%s2631_s3 + $0x2ec] ss:$12 sps:$4 sm:$0xff]  }
  0xdd   :  { %v159_v8 = vpop.f32.mrb[0].mxu0 }
  0xde   :  { %v160_v9 = vadd.f32 %v159_v8, %v47_v6  ;;  %v161_v10 = vpop.f32.mrb[1].mxu0  ;;  %v1945_v6 = vld [vmem:[%s2631_s3 + $0x1d0] ss:$12 sps:$4 sm:$0xff]  }
  0xdf   :  { %v162_v11 = vadd.f32 %v161_v10, %v51_v7  ;;  %v163_v12 = vpop.f32.mrb[2].mxu0  ;;  %v1948_v7 = vld [vmem:[%s2631_s3 + $0x1e4] ss:$12 sps:$4 sm:$0xff]   ;;  %v1946_v10 = vld [vmem:[%s2631_s3 + $0x1e0] ss:$12 sps:$4 sm:$0xff]  }
  0xe0   :  { %v247_v14 = vsub.f32 0.0, %v160_v9  ;;  %v164_v15 = vpop.f32.mrb[3].mxu0  ;;  %v1953_v12 = vld [vmem:[%s2631_s3 + $0x1fc] ss:$12 sps:$4 sm:$0xff]  }
  0xe1   :  { %v248_v16 = vsub.f32 0.0, %v162_v11  ;;  %v1950_v11 = vld [vmem:[%s2631_s3 + $0x1e8] ss:$12 sps:$4 sm:$0xff]   ;;  %v1951_v15 = vld [vmem:[%s2631_s3 + $0x1f8] ss:$12 sps:$4 sm:$0xff]  }
  0xe2   :  { %v252_v18 = vmul.f32 1.442695, %v247_v14 }
  0xe3   :  { %v254_v19 = vmul.f32 1.442695, %v248_v16  ;;  %v1955_v16 = vld [vmem:[%s2631_s3 + $0x200] ss:$12 sps:$4 sm:$0xff]  }
  0xe4   :  { %2032 = vpow2.f32 %v252_v18 }
  0xe5   :  { %2034 = vpow2.f32 %v254_v19  ;;  %v200_v21 = vpop.f32.mrb[4].mxu0  ;;  %v1958_v19 = vld [vmem:[%s2631_s3 + $0x214] ss:$12 sps:$4 sm:$0xff]  }
  0xe6   :  { %v202_v22 = vpop.f32.mrb[5].mxu0  ;;  %v201_v38 = vadd.f32 %v200_v21, %v55_v31  ;;  %v1956_v21 = vld [vmem:[%s2631_s3 + $0x210] ss:$12 sps:$4 sm:$0xff]   ;;  %v1966_v31 = vld [vmem:[%s2631_s3 + $0x240] ss:$12 sps:$4 sm:$0xff]  }
  0xe7   :  { %v203_v23 = vadd.f32 %v202_v22, %v59_v20  ;;  %v204_v24 = vpop.f32.mrb[6].mxu0  ;;  %v1959_v20 = vld [vmem:[%s2631_s3 + $0x2d8] ss:$12 sps:$4 sm:$0xff]  }
  0xe8   :  { %v205_v25 = vpop.f32.mrb[7].mxu0  ;;  %v249_v39 = vsub.f32 0.0, %v201_v38  ;;  %v1960_v22 = vld [vmem:[%s2631_s3 + $0x218] ss:$12 sps:$4 sm:$0xff]   ;;  %v1964_v24 = vld [vmem:[%s2631_s3 + $0x2f0] ss:$12 sps:$4 sm:$0xff]  }
  0xe9   :  { %v250_v26 = vsub.f32 0.0, %v203_v23  ;;  %v1963_v23 = vld [vmem:[%s2631_s3 + $0x22c] ss:$12 sps:$4 sm:$0xff]  }
  0xea   :  { %v256_v42 = vmul.f32 1.442695, %v249_v39  ;;  %v1974_v39 = vld [vmem:[%s2631_s3 + $0x270] ss:$12 sps:$4 sm:$0xff]  }
  0xeb   :  { %v258_v28 = vmul.f32 1.442695, %v250_v26  ;;  %v1961_v26 = vld [vmem:[%s2631_s3 + $0x228] ss:$12 sps:$4 sm:$0xff]  }
  0xed   :  { %2036 = vpow2.f32 %v258_v28  ;;  %v241_v29 = vpop.f32.mrb[8].mxu0  ;;  %v1965_v28 = vld [vmem:[%s2631_s3 + $0x230] ss:$12 sps:$4 sm:$0xff]  }
  0xee   :  { %v2033_v30 = vpop.eup %2032  ;;  %v1806_v32 = vpop.f32.mrb[9].mxu0  ;;  %v242_v8 = vadd.f32 %v241_v29, %v63_v62  ;;  %v1968_v29 = vld [vmem:[%s2631_s3 + $0x244] ss:$12 sps:$4 sm:$0xff]  }
  0xef   :  { %v2035_v33 = vpop.eup %2034  ;;  %v262_v34 = vadd.f32 1.0, %v2033_v30  ;;  %v244_v35 = vpop.f32.mrb[10].mxu0  ;;  %v1969_v32 = vld [vmem:[%s2631_s3 + $0x308] ss:$12 sps:$4 sm:$0xff]   ;;  %v2002_v62 = vld [vmem:[%s2631_s3 + $0x330] ss:$12 sps:$4 sm:$0xff]  }
  0xf0   :  { %v263_v36 = vadd.f32 1.0, %v2035_v33  ;;  %v1807_v37 = vpop.f32.mrb[11].mxu0  ;;  %v251_v14 = vsub.f32 0.0, %v242_v8  ;;  %v1972_v33 = vld [vmem:[%s2631_s3 + $0x25c] ss:$12 sps:$4 sm:$0xff]  }
  0xf1   :  { %2038 = vrcp.f32 %v262_v34  ;;  %v1970_v35 = vld [vmem:[%s2631_s3 + $0x258] ss:$12 sps:$4 sm:$0xff]   ;;  %v1976_v37 = vld [vmem:[%s2631_s3 + $0x274] ss:$12 sps:$4 sm:$0xff]  }
  0xf2   :  { %2040 = vrcp.f32 %v263_v36  ;;  %v260_v18 = vmul.f32 1.442695, %v251_v14  ;;  %v1973_v36 = vld [vmem:[%s2631_s3 + $0x320] ss:$12 sps:$4 sm:$0xff]   ;;  %v2017_v14 = vld [vmem:[%s2633_s5 + $0x50] sm:$0xff]  }
  0xf7   :  { %v2037_v40 = vpop.eup %2036 }
  0xf8   :  { %v265_v41 = vadd.f32 1.0, %v2037_v40  ;;  %v1977_v40 = vld [vmem:[%s2631_s3 + $0x338] ss:$12 sps:$4 sm:$0xff]  }
  0xfa   :  { %2042 = vrcp.f32 %v265_v41  ;;  %v1980_v41 = vld [vmem:[%s2631_s3 + $0x28c] ss:$12 sps:$4 sm:$0xff]  }
  0xfb   :  { %v2039_v43 = vpop.eup %2038  ;;  %2044 = vpow2.f32 %v256_v42  ;;  %v1978_v42 = vld [vmem:[%s2631_s3 + $0x288] ss:$12 sps:$4 sm:$0xff]  }
  0xfc   :  { %v2041_v44 = vpop.eup %2040  ;;  %v272_v48 = vpack.c.bf16 %v2039_v43, %v2039_v43  ;;  %v1981_v43 = vld [vmem:[%s2631_s3 + $0x350] ss:$12 sps:$4 sm:$0xff]  }
  0xfd   :  { %v273_v45 = vpack.c.bf16 %v2041_v44, %v2041_v44  ;;  %v1984_v44 = vld [vmem:[%s2631_s3 + $0x2a4] ss:$12 sps:$4 sm:$0xff]  }
  0xff   :  { %1090 = vmatprep.mubr.bf16.mxu1 %v273_v45  ;;  %1213 = vmatprep.mubr.bf16.mxu0 %v273_v45  ;;  %v1982_v45 = vld [vmem:[%s2631_s3 + $0x2a0] ss:$12 sps:$4 sm:$0xff]  }
 0x100   :  { %1091 = vmatmul.mubr.bf16.vlgmr.msra.gmra.mrb[0].mxu1 %v272_v48  ;;  %1214 = vmatmul.mubr.bf16.vlgmr.msra.gmra.mrb[12].mxu0 %v272_v48  ;;  %v1989_v48 = vld [vmem:[%s2631_s3 + $0x380] ss:$0 sps:$4 sm:$0xff]  }
 0x101   :  { %1100 = vmatpush1.bf16.msra.mxu1 %v1926_v46  ;;  %1746 = vmatpush3.bf16.msra.mxu0 %v1930_v47  ;;  %v1985_v46 = vld [vmem:[%s2631_s3 + $0x368] ss:$12 sps:$4 sm:$0xff]  }
 0x102   :  { %1101 = vmatprep.subr.bf16.mxu1 %v1933_v49  ;;  %1747 = vmatprep.subr.bf16.mxu0 %v1934_v50  ;;  %v1988_v47 = vld [vmem:[%s2631_s3 + $0x2bc] ss:$12 sps:$4 sm:$0xff]   ;;  %v1986_v50 = vld [vmem:[%s2631_s3 + $0x2b8] ss:$12 sps:$4 sm:$0xff]  }
 0x104   :  { %v2043_v56 = vpop.eup %2042 }
 0x105   :  { %1102 = vmatpush1.bf16.msra.mxu1 %v1931_v51  ;;  %1748 = vmatpush3.bf16.msra.mxu0 %v1935_v52  ;;  %v275_v59 = vpack.c.bf16 %v2043_v56, %v2043_v56  ;;  %v2045_v63 = vpop.eup %2044  ;;  %v1056_v51 = vsel %vm1048_vm2, %v1989_v48, 0  ;;  %v1992_v52 = vld [vmem:[%s2631_s3 + $0x2d4] ss:$12 sps:$4 sm:$0xff]  }
 0x106   :  { %1103 = vmatprep.subr.bf16.mxu1 %v1938_v53  ;;  %1749 = vmatprep.subr.bf16.mxu0 %v1939_v54  ;;  %v264_v9 = vadd.f32 1.0, %v2045_v63  ;;  %v1990_v54 = vld [vmem:[%s2631_s3 + $0x2d0] ss:$12 sps:$4 sm:$0xff]   ;;  %v1993_v56 = vld [vmem:[%s2631_s3 + $0x2e8] ss:$12 sps:$4 sm:$0xff]  }
 0x107   :  { %1253 = vmatprep.mubr.bf16.mxu0 %v275_v59  ;;  %1131 = vmatprep.mubr.bf16.mxu1 %v275_v59  ;;  %v2001_v59 = vld [vmem:[%s2631_s3 + $0x31c] ss:$12 sps:$4 sm:$0xff]   ;;  %v2007_v63 = vld [vmem:[%s2631_s3 + $0x34c] ss:$12 sps:$4 sm:$0xff]  }
 0x108   :  { %2046 = vrcp.f32 %v264_v9 }
 0x109   :  { %1104 = vmatpush1.bf16.msra.mxu1 %v1936_v57  ;;  %1750 = vmatpush3.bf16.msra.mxu0 %v1940_v58  ;;  %2048 = vpow2.f32 %v260_v18  ;;  %v1998_v57 = vld [vmem:[%s2631_s3 + $0x304] ss:$12 sps:$4 sm:$0xff]   ;;  %v1996_v58 = vld [vmem:[%s2631_s3 + $0x300] ss:$12 sps:$4 sm:$0xff]   ;;  %v2020_v18 = vld [vmem:[%s2633_s5 + $0x18] sm:$0xff]  }
 0x10a   :  { %1105 = vmatprep.subr.bf16.mxu1 %v1943_v60  ;;  %1751 = vmatprep.subr.bf16.mxu0 %v1944_v61  ;;  %v1999_v60 = vld [vmem:[%s2631_s3 + $0x318] ss:$12 sps:$4 sm:$0xff]   ;;  %v2004_v61 = vld [vmem:[%s2631_s3 + $0x334] ss:$12 sps:$4 sm:$0xff]  }
 0x10d   :  { %1106 = vmatpush1.bf16.msra.mxu1 %v1941_v0  ;;  %1752 = vmatpush3.bf16.msra.mxu0 %v1945_v6  ;;  %v2010_v0 = vld [vmem:[%s2631_s3 + $0x364] ss:$12 sps:$4 sm:$0xff]   ;;  %v425_v6 = vld [vmem:[%s2631_s3 + $0x378] sm:$0xff] }
 0x10e   :  { %1107 = vmatprep.subr.bf16.mxu1 %v1948_v7  ;;  %1753 = vmatprep.subr.bf16.mxu0 %v1949_v4  ;;  %v2008_v7 = vld [vmem:[%s2631_s3 + $0x360] ss:$12 sps:$4 sm:$0xff]   ;;  %v1694_v4 = vcombine.high %v425_v6, %v425_v6  ;;  %v1693_v8 = vcombine.low %v425_v6, %v425_v6 }
 0x10f   :  { %v1699_v6 = vld [vmem:[%s2634_s6] ss:$0 sm:$0xff] }
 0x110   :  { %v1050_v9 = vsel %vm1048_vm2, %v1693_v8, 0 }
 0x111   :  { %1108 = vmatpush1.bf16.msra.mxu1 %v1946_v10  ;;  %1754 = vmatpush3.bf16.msra.mxu0 %v1950_v11  ;;  %v2013_v10 = vld [vmem:[%s2633_s5 + $0x40] sm:$0xff]  }
 0x112   :  { %1109 = vmatprep.subr.bf16.mxu1 %v1953_v12  ;;  %1755 = vmatprep.subr.bf16.mxu0 %v1954_v13  ;;  %v2047_v25 = vpop.eup %2046  ;;  %v2014_v11 = vld [vmem:[%s2633_s5] sm:$0xff]   ;;  %v2015_v12 = vld [vmem:[%s2633_s5 + $0x48] sm:$0xff]  }
 0x113   :  { %v2428_v30 = vpack.c.bf16 %v2047_v25, %v2047_v25  ;;  %v2049_v34 = vpop.eup %2048  ;;  %v2016_v13 = vld [vmem:[%s2633_s5 + $0x8] sm:$0xff]   ;;  %v2027_v25 = vld [vmem:[%s2633_s5 + $0x78] sm:$0xff]  }
 0x114   :  { %v266_v38 = vadd.f32 1.0, %v2049_v34 }
 0x115   :  { %1110 = vmatpush1.bf16.msra.mxu1 %v1951_v15  ;;  %1756 = vmatpush3.bf16.msra.mxu0 %v1955_v16  ;;  %v2018_v15 = vld [vmem:[%s2633_s5 + $0x10] sm:$0xff]   ;;  %v2019_v16 = vld [vmem:[%s2633_s5 + $0x58] sm:$0xff]  }
 0x116   :  { %1111 = vmatprep.subr.bf16.mxu1 %v1958_v19  ;;  %1757 = vmatprep.subr.bf16.mxu0 %v1959_v20  ;;  %2050 = vrcp.f32 %v266_v38  ;;  %v2021_v19 = vld [vmem:[%s2633_s5 + $0x60] sm:$0xff]  }
 0x117   :  { %v2022_v20 = vld [vmem:[%s2633_s5 + $0x20] sm:$0xff]  }
 0x119   :  { %1112 = vmatpush1.bf16.msra.mxu1 %v1956_v21  ;;  %1758 = vmatpush3.bf16.msra.mxu0 %v1960_v22  ;;  %v2023_v21 = vld [vmem:[%s2633_s5 + $0x68] sm:$0xff]  }
 0x11a   :  { %1113 = vmatprep.subr.bf16.mxu1 %v1963_v23  ;;  %1759 = vmatprep.subr.bf16.mxu0 %v1964_v24  ;;  %v2024_v22 = vld [vmem:[%s2633_s5 + $0x28] sm:$0xff]   ;;  %v2025_v23 = vld [vmem:[%s2633_s5 + $0x70] sm:$0xff]  }
 0x11b   :  { %v2026_v24 = vld [vmem:[%s2633_s5 + $0x30] sm:$0xff]  }
 0x11d   :  { %1114 = vmatpush1.bf16.msra.mxu1 %v1961_v26  ;;  %1760 = vmatpush3.bf16.msra.mxu0 %v1965_v28  ;;  %v2028_v26 = vld [vmem:[%s2633_s5 + $0x38] sm:$0xff]  }
 0x11e   :  { %1115 = vmatprep.subr.bf16.mxu1 %v1968_v29  ;;  %1808 = vmatprep.subr.bf16.mxu0 %v2077_v17 }
 0x120   :  { %1254 = vmatmul.mubr.bf16.vlgmr.msra.gmra.mrb[16].mxu0 %v2428_v30  ;;  %v2051_v49 = vpop.eup %2050 }
 0x121   :  { %1116 = vmatpush1.bf16.msra.mxu1 %v1966_v31  ;;  %1809 = vmatpush3.bf16.msra.mxu0 %v1969_v32  ;;  %v276_v53 = vpack.c.bf16 %v2051_v49, %v2051_v49 }
 0x122   :  { %1117 = vmatprep.subr.bf16.mxu1 %v1972_v33  ;;  %1810 = vmatprep.subr.bf16.mxu0 %v2077_v17  ;;  %v427_v33 = vld [vmem:[%s2632_s4] sm:$0x7] }
 0x123   :  { %1820 = vmatprep.mubr.msk.bf16.mxu0 %vm2078_vm1, %v2077_v17  ;;  %v440_v34 = vrot.slane %v427_v33, %v54_v27  ;;  %v436_v48 = vrot.slane %v427_v33, %v50_v5 }
 0x125   :  { %1118 = vmatpush1.bf16.msra.mxu1 %v1970_v35  ;;  %1811 = vmatpush3.bf16.msra.mxu0 %v1973_v36 }
 0x126   :  { %1119 = vmatprep.subr.bf16.mxu1 %v1976_v37  ;;  %1812 = vmatprep.subr.bf16.mxu0 %v2077_v17 }
 0x129   :  { %1120 = vmatpush1.bf16.msra.mxu1 %v1974_v39  ;;  %1813 = vmatpush3.bf16.msra.mxu0 %v1977_v40 }
 0x12a   :  { %1121 = vmatprep.subr.bf16.mxu1 %v1980_v41  ;;  %1814 = vmatprep.subr.bf16.mxu0 %v2077_v17 }
 0x12d   :  { %1122 = vmatpush1.bf16.msra.mxu1 %v1978_v42  ;;  %1815 = vmatpush3.bf16.msra.mxu0 %v1981_v43 }
 0x12e   :  { %1123 = vmatprep.subr.bf16.mxu1 %v1984_v44  ;;  %1816 = vmatprep.subr.bf16.mxu0 %v2077_v17 }
 0x131   :  { %1124 = vmatpush1.bf16.msra.mxu1 %v1982_v45  ;;  %1817 = vmatpush3.bf16.msra.mxu0 %v1985_v46 }
 0x132   :  { %1125 = vmatprep.subr.bf16.mxu1 %v1988_v47  ;;  %1818 = vmatprep.subr.bf16.mxu0 %v2077_v17  ;;  %v432_v47 = vrot.slane %v427_v33, %v46_v3  ;;  %v2031_v3 = vld [vmem:[%s2633_s5 + $0x90] sm:$0x3f]  }
 0x135   :  { %1126 = vmatpush1.bf16.msra.mxu1 %v1986_v50  ;;  %1819 = vmatpush3.bf16.msra.mxu0 %v1056_v51 }
 0x136   :  { %1127 = vmatprep.subr.bf16.mxu1 %v1992_v52  ;;  %1774 = vmatprep.subr.bf16.mxu0 %v2013_v10 }
 0x138   :  { %1821 = vmatmul.mubr.msk.bf16.vlgmr.msra.gmra.mrb[20].mxu0 %vm1044_vm3, %v276_v53 }
 0x139   :  { %1128 = vmatpush1.bf16.msra.mxu1 %v1990_v54  ;;  %1775 = vmatpush3.bf16.msra.mxu0 %v2014_v11 }
 0x13a   :  { %1129 = vmatprep.subr.bf16.mxu1 %v1995_v55  ;;  %1776 = vmatprep.subr.bf16.mxu0 %v2015_v12 }
 0x13d   :  { %1130 = vmatpush1.bf16.msra.mxu1 %v1993_v56  ;;  %1777 = vmatpush3.bf16.msra.mxu0 %v2016_v13 }
 0x13e   :  { %1140 = vmatprep.subr.bf16.mxu1 %v1998_v57  ;;  %1778 = vmatprep.subr.bf16.mxu0 %v2017_v14  ;;  %v2029_v57 = vld [vmem:[%s2633_s5 + $0x80] sm:$0xff]   ;;  %s2079_s5 = smov [#allocation2]  }
 0x13f   :  { %s1561_s9 = sshll.u32 %s2079_s5, 4  ;;  %s1562_s9 = int_to_ptr.vmem [resolvable:$true] %s1561_s9 }
 0x140   :  { %1132 = vmatmul.mubr.bf16.vlgmr.msra.gmra.mrb[0].mxu1 %v2428_v30  ;;  %s2052_s10 = scalar_lea.vmem %s1562_s9, 128  ;;  %p2057_p1 = scmp.lt.s32.totalorder %s1562_s9, %s1562_s9 }
 0x141   :  { %1141 = vmatpush1.bf16.msra.mxu1 %v1996_v58  ;;  %1172 = vmatprep.mubr.bf16.mxu1 %v2076_v2  ;;  %v2005_v2 = vld [vmem:[%s2631_s3 + $0x348] ss:$12 sps:$4 sm:$0xff]   ;;  %p2053_p0 = scmp.ne.s32.totalorder %s1562_s9, %s2052_s10  ;;  %p2058_p2 = scmp.lt.s32.totalorder %s2052_s10, %s2052_s10 }
 0x142   :  { %1142 = vmatprep.subr.bf16.mxu1 %v2001_v59  ;;  %1779 = vmatpush3.bf16.msra.mxu0 %v2018_v15  ;;  %v1471_v59 = vsel %vm1469_vm4, %v2031_v3, 0 }
 0x143   :  { %1780 = vmatprep.subr.bf16.mxu0 %v2019_v16  ;;  %p2059_p3 = por %p2058_p2, %p2057_p1 }
 0x145   :  { %1143 = vmatpush1.bf16.msra.mxu1 %v1999_v60  ;;  %p2060_p4 = pnand %p2059_p3, %p2053_p0 }
 0x146   :  { %1144 = vmatprep.subr.bf16.mxu1 %v2004_v61  ;;  %1781 = vmatpush3.bf16.msra.mxu0 %v2020_v18 }
 0x147   :  { %1782 = vmatprep.subr.bf16.mxu0 %v2021_v19 }
 0x149   :  { %1145 = vmatpush1.bf16.msra.mxu1 %v2002_v62 }
 0x14a   :  { %1146 = vmatprep.subr.bf16.mxu1 %v2007_v63  ;;  %1783 = vmatpush3.bf16.msra.mxu0 %v2022_v20 }
 0x14b   :  { %1784 = vmatprep.subr.bf16.mxu0 %v2023_v21 }
 0x14d   :  { %1147 = vmatpush1.bf16.msra.mxu1 %v2005_v2 }
 0x14e   :  { %1148 = vmatprep.subr.bf16.mxu1 %v2010_v0  ;;  %1785 = vmatpush3.bf16.msra.mxu0 %v2024_v22 }
 0x14f   :  { %1786 = vmatprep.subr.bf16.mxu0 %v2025_v23 }
 0x151   :  { %1149 = vmatpush1.bf16.msra.mxu1 %v2008_v7 }
 0x152   :  { %1696 = vmatprep.subr.msk.bf16.mxu1 %vm1048_vm2, %v1694_v4  ;;  %1787 = vmatpush3.bf16.msra.mxu0 %v2026_v24 }
 0x153   :  { %1788 = vmatprep.subr.bf16.mxu0 %v2027_v25 }
 0x155   :  { %1151 = vmatpush1.bf16.msra.mxu1 %v1050_v9 }
 0x156   :  { %1789 = vmatpush3.bf16.msra.mxu0 %v2028_v26 }
 0x157   :  { %1824 = vmatprep.subr.bf16.mxu0 %v2077_v17 }
 0x158   :  { %1697 = vmatmul.mubr.msk.bf16.vlgmr.msra.gmra.mrb[0].mxu1 %vm1044_vm3, %v276_v53 }
 0x1d3   :  { %v1739_v28 = vpop.f32.mrb[12].mxu0 }
 0x1d4   :  { %v1740_v29 = vpop.f32.mrb[13].mxu0 }
 0x1d5   :  { %v1741_v30 = vadd.f32 %v1740_v29, %v1739_v28  ;;  %v1742_v31 = vpop.f32.mrb[14].mxu0 }
 0x1d6   :  { %v1743_v32 = vpop.f32.mrb[15].mxu0 }
 0x1d7   :  { %v1216_v37 = vadd.f32 %v1741_v30, %v440_v34 }
 0x1f3   :  { %v1761_v35 = vpop.f32.mrb[16].mxu0 }
 0x1f4   :  { %v1762_v36 = vpop.f32.mrb[17].mxu0 }
 0x1f5   :  { %v1763_v38 = vadd.f32 %v1762_v36, %v1761_v35  ;;  %v1764_v39 = vpop.f32.mrb[18].mxu0 }
 0x1f6   :  { %v1765_v40 = vpop.f32.mrb[19].mxu0 }
 0x1f7   :  { %v1256_v41 = vadd.f32 %v1763_v38, %v1216_v37 }
 0x20b   :  { %v1295_v42 = vpop.f32.mrb[20].mxu0 }
 0x20c   :  { %v1296_v43 = vadd.f32 %v1295_v42, %v1256_v41  ;;  %v1822_v44 = vpop.f32.mrb[21].mxu0 }
 0x20d   :  { %v1298_v45 = vpop.f32.mrb[22].mxu0 }
 0x20e   :  { %v1823_v46 = vpop.f32.mrb[23].mxu0  ;;  %v1303_v5 = vmax.f32 %v1296_v43, 0.0 }
 0x210   :  { %v1306_v60 = vpack.c.bf16 %v1303_v5, %v1303_v5 }
 0x22b   :  { %v1174_v49 = vpop.f32.mrb[0].mxu1 }
 0x22c   :  { %v1834_v27 = vadd.f32 %v1174_v49, %v432_v47  ;;  %v1176_v50 = vpop.f32.mrb[1].mxu1 }
 0x22d   :  { %v1835_v51 = vadd.f32 %v1176_v50, %v436_v48  ;;  %v1178_v52 = vpop.f32.mrb[2].mxu1 }
 0x22e   :  { %v1301_v53 = vmax.f32 %v1834_v27, 0.0  ;;  %v1179_v54 = vpop.f32.mrb[3].mxu1 }
 0x22f   :  { %v1302_v55 = vmax.f32 %v1835_v51, 0.0 }
 0x230   :  { %v1304_v58 = vpack.c.bf16 %v1301_v53, %v1301_v53 }
 0x231   :  { %v1305_v56 = vpack.c.bf16 %v1302_v55, %v1302_v55 }
 0x233   :  { %1505 = vmatprep.mubr.bf16.mxu0 %v1305_v56 }
 0x234   :  { %1506 = vmatmul.mubr.bf16.vlgmr.msra.gmra.mrb[24].mxu0 %v1304_v58 }
 0x235   :  { %1825 = vmatpush3.bf16.msra.mxu0 %v2029_v57  ;;  %1830 = vmatprep.mubr.msk.bf16.mxu0 %vm2078_vm1, %v2077_v17 }
 0x236   :  { %1826 = vmatprep.subr.bf16.mxu0 %v2077_v17 }
 0x239   :  { %1827 = vmatpush3.bf16.msra.mxu0 %v2030_v1 }
 0x23a   :  { %1828 = vmatprep.subr.bf16.mxu0 %v2077_v17 }
 0x23d   :  { %1829 = vmatpush3.bf16.msra.mxu0 %v1471_v59 }
 0x240   :  { %1831 = vmatmul.mubr.msk.bf16.vlgmr.msra.gmra.mrb[28].mxu0 %vm1465_vm5, %v1306_v60 }
 0x307   :  { %v1790_v61 = vpop.f32.mrb[24].mxu0 }
 0x308   :  { %v1791_v62 = vpop.f32.mrb[25].mxu0 }
 0x309   :  { %v1792_v63 = vadd.f32 %v1791_v62, %v1790_v61  ;;  %v1793_v2 = vpop.f32.mrb[26].mxu0 }
 0x30a   :  { %v1794_v0 = vpop.f32.mrb[27].mxu0 }
 0x30b   :  { %v1508_v7 = vadd.f32 %v1792_v63, %v1699_v6 }
 0x313   :  { %v1547_v4 = vpop.f32.mrb[28].mxu0 }
 0x314   :  { %v1548_v17 = vadd.f32 %v1547_v4, %v1508_v7  ;;  %v1832_v8 = vpop.f32.mrb[29].mxu0 }
 0x315   :  { %v1550_v9 = vpop.f32.mrb[30].mxu0 }
 0x316   :  { %v1833_v10 = vpop.f32.mrb[31].mxu0  ;;  %1554 = vst.msk [vmem:[#allocation2] sm:$0xff] %vm1553_vm6, %v1548_v17 }
 0x317   :  { %2063 = shalt.err (!%p2060_p4)
}
 0x318   :  { %s2064_s12 = scalar_lea.hbm %s2635_s7, 128 }
 0x319   :  { %p2065_p5 = scmp.ne.s32.totalorder %s2635_s7, %s2064_s12  ;;  %p2068_p6 = scmp.lt.u32.totalorder %s2064_s12, %s2635_s7 }
 0x31b   :  { %p2070_p7 = pnand %p2068_p6, %p2065_p5 }
 0x31d   :  { %2073 = shalt.err (!%p2070_p7)
}
 0x31e   :  { %1564 = dma.vmem_to_hbm [thread:$0]  %s1562_s9, 128, %s2635_s7, [#allocation3]  }
 0x31f   :  { %2074 = dma.done.wait [#allocation3], 128  }
 0x320   :  { %2075 = vsyncadd [#allocation3], 4294967168 }
 0x321   :  { %1568 = vsyncpa [#allocation3], 1 }

</bundles_post_ra>
